<compile_context>
chip_gen: v6e
topology: v6e:2x2x1
jax: 0.10.0
libtpu: 0.0.40
codegen_flags: <defaults>
</compile_context>

<pallas_src>
import jax
import jax.numpy as jnp
from jax.experimental import pallas as pl
from jax.experimental.pallas import tpu as pltpu


def scale_relu_kernel(x_ref, w_ref, b_ref, o_ref):
    # x_ref: (TR, TL) tile; w_ref/b_ref: (TR, 1) per-row params (broadcast over lanes).
    y = x_ref[...] * w_ref[...] + b_ref[...]
    o_ref[...] = jnp.maximum(y, 0).astype(o_ref.dtype)


def _round_up(a, b):
    return ((a + b - 1) // b) * b


def _choose_tiles(R, L, itemsize, *, target_bytes=4 << 20, min_bytes=1 << 20,
                  max_lanes_pass1=16384):
    """Pick (TR, TL): TR % 8 == 0, TL % 128 == 0, block ~target_bytes."""
    R8 = _round_up(R, 8)
    L128 = _round_up(L, 128)

    # Pass 1: lane tile covers L up to a cap (lane-dense stores are the big lever).
    TL = min(L128, max_lanes_pass1)
    rows_for_target = max(8, (target_bytes // (TL * itemsize)) // 8 * 8)
    TR = min(R8, rows_for_target)

    # Pass 2: skinny slab (rows exhausted, block still small) -> grow lanes.
    if TR == R8 and TR * TL * itemsize < min_bytes and TL < L128:
        lanes_for_target = max(128, (target_bytes // (TR * itemsize)) // 128 * 128)
        TL = min(L128, lanes_for_target)

    # Multi-TC friendliness (v7x): avoid a degenerate (1, 1) grid when the slab
    # is big enough to split; shrink one tile so a "parallel" axis has >= 2 blocks.
    if pl.cdiv(R, TR) == 1 and pl.cdiv(L, TL) == 1:
        if R8 >= 16:
            TR = _round_up(pl.cdiv(R, 2), 8)
        elif L128 >= 256:
            TL = _round_up(pl.cdiv(L, 2), 128)

    return TR, TL


def scale_relu(x, weight, bias):
    """x: (N, C, H, W); weight, bias: (1, C, 1, 1). Returns relu(x * w + b)."""
    N, C, H, W = x.shape
    dtype = x.dtype
    itemsize = jnp.dtype(dtype).itemsize
    R = N * C
    L = H * W

    # Lane-dense 2D view: rows = (n, c) pairs, lanes = spatial positions.
    x2 = x.reshape(R, L)

    # Per-row scale/bias columns (row = n*C + c -> channel c). Tiny XLA op;
    # avoids DMAing (1,1,1,1) param blocks every grid step.
    w_rows = jnp.broadcast_to(weight.reshape(1, C), (N, C)).reshape(R, 1).astype(dtype)
    b_rows = jnp.broadcast_to(bias.reshape(1, C), (N, C)).reshape(R, 1).astype(dtype)

    TR, TL = _choose_tiles(R, L, itemsize)
    grid = (pl.cdiv(R, TR), pl.cdiv(L, TL))

    # Scoped-VMEM budget: double-buffered in + out data tiles, plus the (TR, 1)
    # param blocks which are lane-padded to (TR, 128) in VMEM, plus slack.
    block_bytes = TR * TL * itemsize
    param_bytes = TR * 128 * itemsize
    vmem_bytes = 4 * block_bytes + 4 * param_bytes + (2 << 20)
    vmem_limit = int(min(max(vmem_bytes, 16 << 20), 56 << 20))

    out2 = pl.pallas_call(
        scale_relu_kernel,
        out_shape=jax.ShapeDtypeStruct((R, L), dtype),
        grid_spec=pltpu.PrefetchScalarGridSpec(
            num_scalar_prefetch=0,
            grid=grid,
            in_specs=[
                pl.BlockSpec((TR, TL), lambda i, j: (i, j)),
                pl.BlockSpec((TR, 1), lambda i, j: (i, 0)),
                pl.BlockSpec((TR, 1), lambda i, j: (i, 0)),
            ],
            out_specs=pl.BlockSpec((TR, TL), lambda i, j: (i, j)),
        ),
        compiler_params=pltpu.CompilerParams(
            dimension_semantics=("parallel", "parallel"),
            vmem_limit_bytes=vmem_limit,
        ),
    )(x2, w_rows, b_rows)

    return out2.reshape(N, C, H, W)


class ScaleReLUPallas:
    """Mirrors ScaleReLU(nchannels): Scale(nchannels, bias=True, init_scale=1.0) + ReLU."""

    def __init__(self, nchannels, init_scale=1.0):
        self.nchannels = nchannels
        # reset_parameters: weight.fill_(init_scale), bias.fill_(0.0)
        self.weight = jnp.full((1, nchannels, 1, 1), init_scale, dtype=jnp.float32)
        self.bias = jnp.zeros((1, nchannels, 1, 1), dtype=jnp.float32)

    def __call__(self, x):
        return scale_relu(x, self.weight, self.bias)


if __name__ == "__main__":
    key = jax.random.PRNGKey(0)

    def run_case(shape, key):
        N, C, H, W = shape
        kx, kw, kb = jax.random.split(key, 3)
        x = jax.random.normal(kx, (N, C, H, W), dtype=jnp.float32)
        mod = ScaleReLUPallas(nchannels=C)
        # Non-trivial per-channel params so the broadcast path is actually tested.
        mod.weight = jax.random.normal(kw, (1, C, 1, 1), dtype=jnp.float32)
        mod.bias = jax.random.normal(kb, (1, C, 1, 1), dtype=jnp.float32)
        out = jax.block_until_ready(mod(x))
        ref = jnp.maximum(x * mod.weight + mod.bias, 0.0)
        assert out.shape == (N, C, H, W)
        assert jnp.allclose(out, ref, atol=1e-6), f"mismatch vs reference for {shape}"

    k1, k2 = jax.random.split(key)
    # Small aligned case (matches the module's typical NCHW activations).
    run_case((2, 4, 16, 16), k1)
    # Non-aligned case: R=5, L=270 exercises the cdiv grid / boundary-block clipping.
    run_case((1, 5, 9, 30), k2)

    print("KERNEL_OK")
</pallas_src>

<mosaic_0001>
module attributes {stable_mosaic.version = 11 : i64} {
  func.func @scale_relu_kernel(%arg0: i32, %arg1: i32, %arg2: memref<8x128xf32, #tpu.memory_space<vmem>>, %arg3: memref<8x1xf32, #tpu.memory_space<vmem>>, %arg4: memref<8x1xf32, #tpu.memory_space<vmem>>, %arg5: memref<8x128xf32, #tpu.memory_space<vmem>>) attributes {dimension_semantics = [#tpu.dimension_semantics<parallel>, #tpu.dimension_semantics<parallel>], iteration_bounds = array<i64: 1, 2>, scalar_prefetch = 0 : i64, scratch_operands = 0 : i64, tpu.core_type = #tpu.core_type<tc>, window_params = [{transform_indices = @transform_0, window_bounds = array<i64: 8, 128>}, {transform_indices = @transform_1, window_bounds = array<i64: 8, 1>}, {transform_indices = @transform_2, window_bounds = array<i64: 8, 1>}, {transform_indices = @transform_3, window_bounds = array<i64: 8, 128>}]} {
    %c0 = arith.constant 0 : index
    %c0_0 = arith.constant 0 : index
    %0 = vector.load %arg2[%c0, %c0_0] : memref<8x128xf32, #tpu.memory_space<vmem>>, vector<8x128xf32>
    %c0_1 = arith.constant 0 : index
    %c0_2 = arith.constant 0 : index
    %1 = vector.load %arg3[%c0_1, %c0_2] : memref<8x1xf32, #tpu.memory_space<vmem>>, vector<8x1xf32>
    %2 = vector.broadcast %1 : vector<8x1xf32> to vector<8x128xf32>
    %3 = arith.mulf %0, %2 : vector<8x128xf32>
    %c0_3 = arith.constant 0 : index
    %c0_4 = arith.constant 0 : index
    %4 = vector.load %arg4[%c0_3, %c0_4] : memref<8x1xf32, #tpu.memory_space<vmem>>, vector<8x1xf32>
    %5 = vector.broadcast %4 : vector<8x1xf32> to vector<8x128xf32>
    %6 = arith.addf %3, %5 : vector<8x128xf32>
    %cst = arith.constant 0.000000e+00 : f32
    %7 = vector.broadcast %cst : f32 to vector<8x128xf32>
    %8 = arith.maximumf %6, %7 : vector<8x128xf32>
    %c0_5 = arith.constant 0 : index
    %c0_6 = arith.constant 0 : index
    %9 = vector.load %arg5[%c0_5, %c0_6] : memref<8x128xf32, #tpu.memory_space<vmem>>, vector<8x128xf32>
    tpu.vector_store %arg5[%c0_5, %c0_6], %8 {strides = array<i32>} : memref<8x128xf32, #tpu.memory_space<vmem>>, vector<8x128xf32>,
    return
  }
  func.func @transform_0(%arg0: i32, %arg1: i32) -> (i32, i32) {
    %c0_i32 = arith.constant 0 : i32
    return %arg0, %arg1 : i32, i32
  }
  func.func @transform_1(%arg0: i32, %arg1: i32) -> (i32, i32) {
    %c0_i32 = arith.constant 0 : i32
    %c0_i32_0 = arith.constant 0 : i32
    return %arg0, %c0_i32 : i32, i32
  }
  func.func @transform_2(%arg0: i32, %arg1: i32) -> (i32, i32) {
    %c0_i32 = arith.constant 0 : i32
    %c0_i32_0 = arith.constant 0 : i32
    return %arg0, %c0_i32 : i32, i32
  }
  func.func @transform_3(%arg0: i32, %arg1: i32) -> (i32, i32) {
    %c0_i32 = arith.constant 0 : i32
    return %arg0, %arg1 : i32, i32
  }
}

</mosaic_0001>

<bundles_post_ra>
// kernel: tpu_custom_call.1
= control target key start
LH: loop header
LB: loop body
LE: loop exit
PB: predicated region body
PF: predicated region fallthrough
CT: control target
= control target key end

     0   :  { %8 = vsyncpa [#allocation3], 0  ;;  %s641_s0 = inlined_call_operand.vmem [shape: f32[8,256], index: 0, kind: input, shape index: {}]   ;;  %s642_s1 = inlined_call_operand.vmem [shape: f32[8,1], index: 1, kind: input, shape index: {}]   ;;  %s643_s2 = inlined_call_operand.vmem [shape: f32[8,1], index: 2, kind: input, shape index: {}]   ;;  %s644_s3 = inlined_call_operand.hbm [shape: f32[8,256], index: 3, kind: output, shape index: {}]  }
   0x1   :  { %10 = vsyncpa [#allocation3 + $0x1], 0  ;;  %s536_s12 = smov 0   ;;  %s538_s13 = smov 0  }
   0x2   :  { %s540_s14 = smov 0   ;;  %s542_s15 = smov 0  }
   0x3   :  { %s544_s16 = smov 0   ;;  %s546_s17 = smov 0  }
   0x4 LB: > { %s366_s18 = sadd.s32 4294967295, %s512_s17   ;;  %s367_s19 = sadd.s32 4294967294, %s512_s17   ;;  %s512_s17 = sphi %s546_s17, %s16_s17   ;;  %s508_s16 = sphi %s544_s16, %s651_s16   ;;  %s504_s15 = sphi %s542_s15, %s650_s15   ;;  %s500_s14 = sphi %s540_s14, %s649_s14   ;;  %s496_s13 = sphi %s538_s13, %s648_s13   ;;  %s492_s12 = sphi %s536_s12, %s647_s12  }
   0x5   : > { %s25_s20 = sadd.s32 1, %s508_s16  ;;  %s117_s21 = sadd.s32 1, %s500_s14 }
   0x6   : > { %p26_p0 = scmp.ge.s32.totalorder %s25_s20, 2  ;;  %p127_p1 = scmp.ne.s32.totalorder %s500_s14, %s496_s13 }
   0x7   : > { %p128_p2 = scmp.eq.s32.totalorder %s366_s18, 1  ;;  %p133_p3 = scmp.ne.s32.totalorder %s496_s13, %s492_s12 }
   0x8   : > { %s653_s20 = smov (%p26_p0, %s25_s20), 0  ;;  %p134_p5 = scmp.eq.s32.totalorder %s367_s19, 1 }
   0x9   : > { %p576_p4 = por %p128_p2, %p127_p1  ;;  %s113_s23 = ssub.s32 %s508_s16, %s653_s20 }
   0xa   : > { %p372_p6 = scmp.ge.s32.totalorder %s512_s17, 1  ;;  %p115_p7 = scmp.eq.s32.totalorder %s113_s23, 0 }
   0xb   : > { %p583_p8 = por %p134_p5, %p133_p3  ;;  %p177_p9 = scmp.lt.s32.totalorder %s512_s17, 3 }
   0xc   : > { %s589_s25 = scalar_select %p115_p7, %s500_s14, %s117_s21  }
   0xd   : > { %p178_p10 = pnand %p372_p6, %p177_p9 }
   0xe   : > { %p214_p11 = scmp.lt.s32.totalorder (!%p178_p10), %s504_s15, 1  ;;  %s209_s5 = sand.u32 (!%p178_p10), 1, %s496_s13  }
   0xf   : > { %181 = sbr.rel (%p178_p10) target bundleno = 167 (0xa7), region = 32  ;;  %s373_s9 = sshll.u32 (!%p178_p10), %s209_s5, 3 }
  0x10   : > { %s376_s10 = sshll.u32 (!%p178_p10), %s504_s15, 7  ;;  %s211_s11 = scalar_lea.vmem (!%p178_p10), [#allocation2], %s373_s9 }
  0x11   : > { %s261_s18 = sshll.u32 (!%p178_p10), %s211_s11, 4  ;;  %s259_s23 = scalar_lea.hbm (!%p178_p10), %s644_s3, %s376_s10  ;;  %s262_s18 = int_to_ptr.vmem [resolvable:$true] %s261_s18 }
  0x12   : > { %s246_s26 = scalar_lea.sflag (!%p178_p10), [#allocation3], %s209_s5  ;;  %s436_s27 = scalar_lea.vmem (!%p178_p10), %s262_s18, 128 }
  0x13   : > { %p437_p12 = scmp.ne.s32.totalorder (!%p178_p10), %s262_s18, %s436_s27  ;;  %s515_s28 = smov (!%p178_p10), [#allocation2]  }
  0x14   : > { %v229_v0 = vld [vmem:[%s642_s1] sm:$0xff]  ;;  %v514_v1 = vmov 0   ;;  %s215_s30 = scalar_select %p214_p11, %s504_s15, 1 }
  0x15   : > { %435 = vset.pattern.permute.xlu0 %v514_v1  ;;  %v236_v2 = vld [vmem:[%s643_s2] sm:$0xff]  ;;  %p438_p13 = pnand %p437_p12, %p576_p4  ;;  %s440_s29 = sshll.u32 %s515_s28, 4  ;;  %s441_s29 = int_to_ptr.vmem [resolvable:$false] %s440_s29 }
  0x16   : > { %232 = vperm.xlu0 %435, %v229_v0   ;;  %s374_s4 = sshll.u32 %s215_s30, 3  ;;  %s442_s15 = scalar_lea.vmem %s441_s29, 256 }
  0x17   : > { %s219_s8 = scalar_lea.vmem %s641_s0, %s374_s4  ;;  %p439_p0 = pneg %p438_p13 }
  0x18   : > { %v228_v4 = vld [vmem:[%s219_s8] sm:$0xff]  ;;  %p443_p1 = scmp.lt.s32.totalorder %s262_s18, %s441_s29  ;;  %p444_p2 = scmp.lt.s32.totalorder %s442_s15, %s436_s27 }
  0x1a   : > { %239 = vperm.xlu0 %435, %v236_v2   ;;  %p445_p3 = por %p444_p2, %p443_p1 }
  0x1c   : > { %p446_p5 = pnand %p445_p3, %p439_p0 }
  0x91   : > { %v233_v3 = vpop.permute.xlu0 %232 }
  0x92   : > { %v235_v5 = vmul.f32 %v233_v3, %v228_v4 }
  0x95   : > { %v240_v6 = vpop.permute.xlu0 %239 }
  0x96   : > { %v242_v7 = vadd.f32 %v240_v6, %v235_v5 }
  0x98   : > { %v243_v8 = vmax.f32 %v242_v7, 0.0 }
  0x9a   : > { %244 = vst [vmem:[%s211_s11] sm:$0xff] %v243_v8 }
  0x9b   : > { %449 = shalt.err (!%p446_p5)
}
  0x9c   : > { %s450_s30 = scalar_lea.hbm %s259_s23, 128  ;;  %s454_s6 = scalar_lea.hbm %s644_s3, 256 }
  0x9d   : > { %p451_p6 = scmp.ne.s32.totalorder %s259_s23, %s450_s30  ;;  %p455_p10 = scmp.lt.s32.totalorder %s259_s23, %s644_s3 }
  0x9e   : > { %p456_p11 = scmp.lt.s32.totalorder %s454_s6, %s450_s30 }
  0x9f   : > { %p452_p7 = pnand %p451_p6, %p576_p4 }
  0xa0   : > { %p457_p12 = por %p456_p11, %p455_p10 }
  0xa1   : > { %p453_p9 = pneg %p452_p7 }
  0xa3   : > { %p458_p13 = pnand %p457_p12, %p453_p9 }
  0xa5   : > { %461 = shalt.err (!%p458_p13)
}
  0xa6   : > { %379 = dma.vmem_to_hbm [thread:$0]  (%p576_p4), %s262_s18, 128, %s259_s23, %s246_s26  }
  0xa7 PF: > { %p385_p0 = scmp.ge.s32.totalorder %s512_s17, 2  ;;  %s273_s9 = sand.u32 1, %s492_s12  }
  0xa8   : > { %s274_s10 = scalar_lea.sflag [#allocation3], %s273_s9 }
  0xa9   : > { %p382_p1 = pnand %p385_p0, %p583_p8 }
  0xab   : > { %p383_p2 = pneg %p382_p1 }
  0xad   : > { %487 = dma.done.wait (%p383_p2), %s274_s10, 128  }
  0xae   : > { %489 = vsyncadd (%p383_p2), %s274_s10, 4294967168  ;;  %s16_s17 = sadd.s32 1, %s512_s17   ;;  %s647_s12 = smov %s496_s13 }
  0xaf   : > { %p13_p3 = scmp.ge.s32.totalorder %s16_s17, 4   ;;  %s648_s13 = smov %s500_s14 }
  0xb0   : > { %s649_s14 = smov %s589_s25  ;;  %s650_s15 = smov %s508_s16 }
  0xb1   : > { %s651_s16 = smov %s653_s20  ;;  %15 = sbr.rel (!%p13_p3) target bundleno = 4 (0x4), region = 73 }
  0xb6   :  { %279 = vsyncpa [#allocation3], 1 }
  0xb7   :  { %281 = vsyncpa [#allocation3 + $0x1], 1 }

</bundles_post_ra>
